<compile_context>
chip_gen: v5e
topology: v5e:2x2
jax: 0.10.0
libtpu: 0.0.40
codegen_flags: <defaults>
</compile_context>

<pallas_src>
import functools
import math

import jax
import jax.numpy as jnp
from jax.experimental import pallas as pl
from jax.experimental.pallas import tpu as pltpu

LANE = 128


def _round_up(n: int, m: int) -> int:
    return ((n + m - 1) // m) * m


def _vmem_capacity_bytes() -> int:
    """Per-core VMEM capacity; conservative 64 MiB (v7x) fallback if query fails."""
    try:
        info = pltpu.get_tpu_info()
        cap = getattr(info, "vmem_capacity_bytes", None)
        if cap:
            return int(cap)
    except Exception:
        pass
    return 64 << 20


# ----------------------------------------------------------------------------- kernel
def _gcc_kernel(x_ref, w_enc_ref, b_enc_ref, w_dec_ref, b_dec_ref, *rest,
                jumprelu: bool, squeeze: float, acc_in_out: bool):
    """One (batch tile i, O tile o, G tile g) step of fused encode + decode.

    encode (this G tile, recomputed per o tile): f = relu(x @ W_enc[:, g] + b_enc[g]) [* gate]
    decode (accumulate over g):                  acc[:, o] += f @ W_dec[g, o]
    at last G tile (scratch path):               out[:, o] = acc + b_dec[o]
    """
    if jumprelu:
        thr_ref, rest = rest[0], rest[1:]
    feat_ref = rest[0]
    out_ref = rest[1]
    acc_ref = out_ref if acc_in_out else rest[2]

    g = pl.program_id(2)

    # ---- encode (x tile already in compute dtype, no per-step cast) ------------------
    pre = jnp.dot(x_ref[...], w_enc_ref[...],
                  preferred_element_type=jnp.float32)            # (tb, tg)  MXU
    pre = pre + b_enc_ref[...]                                   # f32 bias broadcast
    f = jnp.maximum(pre, 0.0)                                    # ReLU

    if jumprelu:
        # squeeze_sigmoid(z) = 1.01 / (1 + exp(-squeeze*z)) - 0.01  (sigmoid -> EUP slot)
        gate = 1.01 * jax.nn.sigmoid(squeeze * (f - thr_ref[...])) - 0.01
        f = jnp.maximum(f * gate, 0.0)                           # final ReLU

    f_c = f.astype(w_dec_ref.dtype)                              # compute dtype for MXU
    # If feat storage dtype == compute dtype the stored features are exactly what the
    # decode consumes (out == feat @ W_dec + b_dec).  Otherwise keep full-precision f.
    feat_ref[...] = f_c if feat_ref.dtype == f_c.dtype else f.astype(feat_ref.dtype)

    # ---- decode: accumulate this G tile's contribution to the (tb, to) output block --
    partial = jnp.dot(f_c, w_dec_ref[...],
                      preferred_element_type=jnp.float32)        # (tb, to)  MXU

    if acc_in_out:
        # f32 output block is resident across g -> accumulate in place, no scratch.
        @pl.when(g == 0)
        def _init():
            out_ref[...] = b_dec_ref[...] + partial

        @pl.when(g > 0)
        def _acc():
            out_ref[...] += partial
    else:
        @pl.when(g == 0)
        def _init():
            acc_ref[...] = jnp.zeros_like(acc_ref)

        acc_ref[...] += partial

        @pl.when(g == pl.num_programs(2) - 1)
        def _finalize():
            out_ref[...] = (acc_ref[...] + b_dec_ref[...]).astype(out_ref.dtype)


# ----------------------------------------------------------------------------- prepare
def prepare_gcc_params(w_enc, b_enc, w_dec, b_dec, threshold=None, *,
                       compute_dtype=jnp.bfloat16, tg=None, to=None):
    """Pad (lane-dense) and cast the static parameters ONCE, outside the forward path.

    Returns (prepared_arrays, meta).  Re-use across gcc_forward calls.
    """
    d_in, G = w_enc.shape
    G_w, O = w_dec.shape
    assert G == G_w, "W_enc / W_dec shapes inconsistent"
    f32 = jnp.float32

    vmem_cap = _vmem_capacity_bytes()
    big_vmem = vmem_cap >= (96 << 20)            # v5e/v6e (128 MiB) vs v7x (64 MiB)
    if tg is None:
        tg = 2048 if big_vmem else 1024
    if to is None:
        to = 2048 if big_vmem else 1024

    tg_eff = max(LANE, min(_round_up(int(tg), LANE), _round_up(G, LANE)))
    to_eff = max(LANE, min(_round_up(int(to), LANE), _round_up(O, LANE)))
    Di_p = _round_up(d_in, LANE)
    G_p = _round_up(G, tg_eff)
    O_p = _round_up(O, to_eff)

    def pad2(a, shape, dt):
        a = a.astype(dt)
        if a.shape == shape:
            return a
        return jnp.zeros(shape, dt).at[:a.shape[0], :a.shape[1]].set(a)

    def padrow(v, n, dt):
        v = v.astype(dt).reshape(1, -1)
        if v.shape[1] == n:
            return v
        return jnp.zeros((1, n), dt).at[:, :v.shape[1]].set(v)

    prepared = {
        "w_enc": pad2(w_enc, (Di_p, G_p), compute_dtype),
        "w_dec": pad2(w_dec, (G_p, O_p), compute_dtype),
        "b_enc": padrow(b_enc, G_p, f32),
        "b_dec": padrow(b_dec, O_p, f32),
        "threshold": None if threshold is None else padrow(threshold, G_p, f32),
    }
    meta = {"d_in": d_in, "G": G, "O": O, "Di_p": Di_p, "G_p": G_p, "O_p": O_p,
            "tg": tg_eff, "to": to_eff, "compute_dtype": compute_dtype,
            "vmem_cap": vmem_cap}
    return prepared, meta


# ----------------------------------------------------------------------------- forward
def gcc_forward(x, prepared, meta, *, jumprelu=False, squeeze=10.0, tb=None,
                feat_dtype=jnp.bfloat16, out_dtype=None):
    """x: (B, d_in) -> (features (B, G), out (B, O)) using pre-padded params."""
    B, d_in = x.shape
    assert d_in == meta["d_in"], "x feature dim inconsistent with prepared params"
    cdt = meta["compute_dtype"]
    f32 = jnp.float32
    out_dtype = x.dtype if out_dtype is None else out_dtype

    Di_p, G_p, O_p = meta["Di_p"], meta["G_p"], meta["O_p"]
    tg, to = meta["tg"], meta["to"]
    vmem_cap = meta["vmem_cap"]

    if tb is None:
        tb = 512 if vmem_cap >= (96 << 20) else 256   # lift arithmetic intensity where VMEM allows
    tb_eff = max(8, min(_round_up(int(tb), 8), _round_up(B, 8)))
    B_p = _round_up(B, tb_eff)

    # x padded & cast ONCE per call into compute dtype (kernel never re-casts per G step).
    if x.shape == (B_p, Di_p) and x.dtype == jnp.dtype(cdt):
        x_p = x
    else:
        x_p = jnp.zeros((B_p, Di_p), cdt).at[:B, :d_in].set(x.astype(cdt))

    # f32 output block can serve as the accumulator (resident across g) -> no scratch.
    acc_in_out = jnp.dtype(out_dtype) == jnp.dtype(jnp.float32)

    inputs = [x_p, prepared["w_enc"], prepared["b_enc"],
              prepared["w_dec"], prepared["b_dec"]]
    in_specs = [
        pl.BlockSpec((tb_eff, Di_p), lambda i, o, g: (i, 0)),   # x batch tile
        pl.BlockSpec((Di_p, tg),     lambda i, o, g: (0, g)),   # W_enc G-column block
        pl.BlockSpec((1, tg),        lambda i, o, g: (0, g)),   # b_enc block
        pl.BlockSpec((tg, to),       lambda i, o, g: (g, o)),   # W_dec (G-row, O-col) block
        pl.BlockSpec((1, to),        lambda i, o, g: (0, o)),   # b_dec block
    ]
    if jumprelu:
        thr_p = prepared.get("threshold")
        if thr_p is None:
            thr_p = jnp.zeros((1, G_p), f32)
        inputs.append(thr_p)
        in_specs.append(pl.BlockSpec((1, tg), lambda i, o, g: (0, g)))

    out_specs = [
        pl.BlockSpec((tb_eff, tg), lambda i, o, g: (i, g)),     # features (lane-dense)
        pl.BlockSpec((tb_eff, to), lambda i, o, g: (i, o)),     # out (resident over g)
    ]
    scratch = () if acc_in_out else (pltpu.VMEM((tb_eff, to), f32),)

    # --- VMEM budget: double-buffered blocks + accumulator + f32 temporaries ----------
    nb = lambda shape, dt: math.prod(shape) * jnp.dtype(dt).itemsize
    work = (2 * nb((tb_eff, Di_p), cdt)
            + 2 * nb((Di_p, tg), cdt)
            + 2 * nb((tg, to), cdt)
            + 2 * nb((1, tg), f32) * (2 if jumprelu else 1)
            + 2 * nb((1, to), f32)
            + 2 * nb((tb_eff, tg), feat_dtype)
            + 2 * nb((tb_eff, to), out_dtype)
            + (0 if acc_in_out else nb((tb_eff, to), f32))
            + 6 * nb((tb_eff, tg), f32))          # jumprelu gate temporaries (pessimistic)
    vmem_limit = max(16 << 20, min(int(work * 1.3), int(vmem_cap * 0.9)))

    kernel = functools.partial(_gcc_kernel, jumprelu=jumprelu,
                               squeeze=float(squeeze), acc_in_out=acc_in_out)

    # Grid: batch tiles (parallel), O tiles, then G (decode reduction) last.
    # (O axis left "arbitrary": its feat writes overlap across o tiles, so we only
    #  shard the batch axis across v7x's two TensorCores.)
    grid = (B_p // tb_eff, O_p // to, G_p // tg)

    feat_p, out_p = pl.pallas_call(
        kernel,
        out_shape=(jax.ShapeDtypeStruct((B_p, G_p), feat_dtype),
                   jax.ShapeDtypeStruct((B_p, O_p), out_dtype)),
        grid_spec=pltpu.PrefetchScalarGridSpec(
            num_scalar_prefetch=0,
            grid=grid,
            in_specs=in_specs,
            out_specs=out_specs,
            scratch_shapes=scratch,
        ),
        compiler_params=pltpu.CompilerParams(
            dimension_semantics=("parallel", "arbitrary", "arbitrary"),
            vmem_limit_bytes=vmem_limit),
    )(*inputs)

    G, O = meta["G"], meta["O"]
    return feat_p[:B, :G], out_p[:B, :O]


# ----------------------------------------------------------------------------- params
def init_gcc_params(key, input_dims, num_blocks, expansion=32, dtype=jnp.float32):
    """Deterministic synthetic init mirroring the PyTorch shapes
    (kaiming_uniform_ defaults: gain=sqrt(2), fan_in = dim 1)."""
    gcc_dims = input_dims * expansion
    output_dims = input_dims * num_blocks
    k_enc, k_dec = jax.random.split(key)

    def kaiming_uniform(k, shape):
        fan_in = shape[1]
        bound = jnp.sqrt(2.0) * jnp.sqrt(3.0 / fan_in)
        return jax.random.uniform(k, shape, dtype, minval=-bound, maxval=bound)

    return {
        "W_enc": kaiming_uniform(k_enc, (input_dims, gcc_dims)),
        "b_enc": jnp.zeros((gcc_dims,), dtype),
        "W_dec": kaiming_uniform(k_dec, (gcc_dims, output_dims)),
        "b_dec": jnp.zeros((output_dims,), dtype),
        "threshold": jnp.zeros((gcc_dims,), dtype),
    }


def gcc_reference(x, p, *, jumprelu=False, squeeze=10.0):
    """Pure-JAX reference matching the PyTorch forward."""
    pre = x @ p["W_enc"] + p["b_enc"]
    f = jnp.maximum(pre, 0.0)
    if jumprelu:
        gate = 1.01 / (1.0 + jnp.exp(-squeeze * (f - p["threshold"]))) - 0.01
        f = f * gate
    f = jnp.maximum(f, 0.0)
    out = f @ p["W_dec"] + p["b_dec"]
    return f, out


# ----------------------------------------------------------------------------- main
if __name__ == "__main__":
    # Small shapes consistent with the module:
    # input_dims=8, expansion=32 -> gcc_dims=256, num_blocks=4 -> output_dims=32, batch=8.
    input_dims, num_blocks, expansion = 8, 4, 32
    batch = 8

    key = jax.random.PRNGKey(0)
    k_x, k_p = jax.random.split(key)
    params = init_gcc_params(k_p, input_dims, num_blocks, expansion)
    x = jax.random.normal(k_x, (batch, input_dims), jnp.float32)

    feat_ref32, out_ref32 = gcc_reference(x, params, jumprelu=False)
    featj_ref32, outj_ref32 = gcc_reference(x, params, jumprelu=True, squeeze=10.0)

    # --- 1) f32 MXU path (tight check), params prepared once ---------------------------
    prep32, meta32 = prepare_gcc_params(
        params["W_enc"], params["b_enc"], params["W_dec"], params["b_dec"],
        threshold=params["threshold"], compute_dtype=jnp.float32)

    feat, out = gcc_forward(x, prep32, meta32, feat_dtype=jnp.float32)
    jax.block_until_ready((feat, out))
    assert feat.shape == feat_ref32.shape and out.shape == out_ref32.shape
    assert jnp.allclose(feat, feat_ref32, atol=2e-5, rtol=2e-5)
    assert jnp.allclose(out, out_ref32, atol=2e-5, rtol=2e-5)

    # --- 2) jumprelu path (threshold gate fused in-kernel), same prepared params -------
    featj, outj = gcc_forward(x, prep32, meta32, jumprelu=True, squeeze=10.0,
                              feat_dtype=jnp.float32)
    jax.block_until_ready((featj, outj))
    assert jnp.allclose(featj, featj_ref32, atol=1e-4, rtol=1e-4)
    assert jnp.allclose(outj, outj_ref32, atol=1e-4, rtol=1e-4)

    # --- 3) default fast path: bf16 MXU + bf16 features + bf16 out (scratch acc path) --
    prep16, meta16 = prepare_gcc_params(
        params["W_enc"], params["b_enc"], params["W_dec"], params["b_dec"],
        threshold=params["threshold"])                       # compute_dtype defaults bf16
    featb, outb = gcc_forward(x, prep16, meta16, out_dtype=jnp.bfloat16)
    jax.block_until_ready((featb, outb))
    scale_o = float(jnp.max(jnp.abs(out_ref32))) + 1e-6
    scale_f = float(jnp.max(jnp.abs(feat_ref32))) + 1e-6
    assert float(jnp.max(jnp.abs(outb.astype(jnp.float32) - out_ref32))) / scale_o < 5e-2
    assert float(jnp.max(jnp.abs(featb.astype(jnp.float32) - feat_ref32))) / scale_f < 5e-2

    # --- 4) bf16 compute with f32 outputs (in-place out accumulation path) -------------
    featm, outm = gcc_forward(x, prep16, meta16, feat_dtype=jnp.float32)
    jax.block_until_ready((featm, outm))
    assert float(jnp.max(jnp.abs(outm - out_ref32))) / scale_o < 5e-2

    print("KERNEL_OK")
</pallas_src>

<mosaic_0001>
module attributes {stable_mosaic.version = 11 : i64} {
  func.func @_gcc_kernel(%arg0: i32, %arg1: i32, %arg2: i32, %arg3: memref<8x128xf32, #tpu.memory_space<vmem>>, %arg4: memref<128x256xf32, #tpu.memory_space<vmem>>, %arg5: memref<1x256xf32, #tpu.memory_space<vmem>>, %arg6: memref<256x128xf32, #tpu.memory_space<vmem>>, %arg7: memref<1x128xf32, #tpu.memory_space<vmem>>, %arg8: memref<8x256xf32, #tpu.memory_space<vmem>>, %arg9: memref<8x128xf32, #tpu.memory_space<vmem>>) attributes {dimension_semantics = [#tpu.dimension_semantics<parallel>, #tpu.dimension_semantics<arbitrary>, #tpu.dimension_semantics<arbitrary>], iteration_bounds = array<i64: 1, 1, 1>, scalar_prefetch = 0 : i64, scratch_operands = 0 : i64, tpu.core_type = #tpu.core_type<tc>, window_params = [{transform_indices = @transform_0, window_bounds = array<i64: 8, 128>}, {transform_indices = @transform_1, window_bounds = array<i64: 128, 256>}, {transform_indices = @transform_2, window_bounds = array<i64: 1, 256>}, {transform_indices = @transform_3, window_bounds = array<i64: 256, 128>}, {transform_indices = @transform_4, window_bounds = array<i64: 1, 128>}, {transform_indices = @transform_5, window_bounds = array<i64: 8, 256>}, {transform_indices = @transform_6, window_bounds = array<i64: 8, 128>}]} {
    %c0 = arith.constant 0 : index
    %c0_0 = arith.constant 0 : index
    %0 = vector.load %arg3[%c0, %c0_0] : memref<8x128xf32, #tpu.memory_space<vmem>>, vector<8x128xf32>
    %c0_1 = arith.constant 0 : index
    %c0_2 = arith.constant 0 : index
    %1 = vector.load %arg4[%c0_1, %c0_2] : memref<128x256xf32, #tpu.memory_space<vmem>>, vector<128x256xf32>
    %cst = arith.constant dense<0.000000e+00> : vector<8x256xf32>
    %2 = tpu.matmul %0, %1, %cst {dimension_numbers = #tpu.dot_dimension_numbers<[1], [0], [0], [1], [0, 0, 1, 1], [], []>} : vector<8x128xf32>, vector<128x256xf32>, vector<8x256xf32> -> vector<8x256xf32>
    %c0_3 = arith.constant 0 : index
    %c0_4 = arith.constant 0 : index
    %3 = vector.load %arg5[%c0_3, %c0_4] : memref<1x256xf32, #tpu.memory_space<vmem>>, vector<1x256xf32>
    %4 = vector.broadcast %3 : vector<1x256xf32> to vector<8x256xf32>
    %5 = arith.addf %2, %4 : vector<8x256xf32>
    %cst_5 = arith.constant 0.000000e+00 : f32
    %6 = vector.broadcast %cst_5 : f32 to vector<8x256xf32>
    %7 = arith.maximumf %5, %6 : vector<8x256xf32>
    %c0_6 = arith.constant 0 : index
    %c0_7 = arith.constant 0 : index
    %8 = vector.load %arg8[%c0_6, %c0_7] : memref<8x256xf32, #tpu.memory_space<vmem>>, vector<8x256xf32>
    tpu.vector_store %arg8[%c0_6, %c0_7], %7 {strides = array<i32>} : memref<8x256xf32, #tpu.memory_space<vmem>>, vector<8x256xf32>,
    %c0_8 = arith.constant 0 : index
    %c0_9 = arith.constant 0 : index
    %9 = vector.load %arg6[%c0_8, %c0_9] : memref<256x128xf32, #tpu.memory_space<vmem>>, vector<256x128xf32>
    %cst_10 = arith.constant dense<0.000000e+00> : vector<8x128xf32>
    %10 = tpu.matmul %7, %9, %cst_10 {dimension_numbers = #tpu.dot_dimension_numbers<[1], [0], [0], [1], [0, 0, 1, 1], [], []>} : vector<8x256xf32>, vector<256x128xf32>, vector<8x128xf32> -> vector<8x128xf32>
    %c0_i32 = arith.constant 0 : i32
    %11 = arith.cmpi eq, %arg2, %c0_i32 : i32
    %12 = arith.extui %11 : i1 to i32
    %c0_i32_11 = arith.constant 0 : i32
    %13 = arith.cmpi ne, %12, %c0_i32_11 : i32
    scf.if %13 {
      %c0_14 = arith.constant 0 : index
      %c0_15 = arith.constant 0 : index
      %17 = vector.load %arg7[%c0_14, %c0_15] : memref<1x128xf32, #tpu.memory_space<vmem>>, vector<1x128xf32>
      %18 = vector.broadcast %17 : vector<1x128xf32> to vector<8x128xf32>
      %19 = arith.addf %18, %10 : vector<8x128xf32>
      %c0_16 = arith.constant 0 : index
      %c0_17 = arith.constant 0 : index
      %20 = vector.load %arg9[%c0_16, %c0_17] : memref<8x128xf32, #tpu.memory_space<vmem>>, vector<8x128xf32>
      tpu.vector_store %arg9[%c0_16, %c0_17], %19 {strides = array<i32>} : memref<8x128xf32, #tpu.memory_space<vmem>>, vector<8x128xf32>,
    } else {
    }
    %c0_i32_12 = arith.constant 0 : i32
    %14 = arith.cmpi sgt, %arg2, %c0_i32_12 : i32
    %15 = arith.extui %14 : i1 to i32
    %c0_i32_13 = arith.constant 0 : i32
    %16 = arith.cmpi ne, %15, %c0_i32_13 : i32
    scf.if %16 {
      %c0_14 = arith.constant 0 : index
      %c0_15 = arith.constant 0 : index
      %17 = vector.load %arg9[%c0_14, %c0_15] : memref<8x128xf32, #tpu.memory_space<vmem>>, vector<8x128xf32>
      %18 = arith.addf %17, %10 : vector<8x128xf32>
      %c0_16 = arith.constant 0 : index
      %c0_17 = arith.constant 0 : index
      %19 = vector.load %arg9[%c0_16, %c0_17] : memref<8x128xf32, #tpu.memory_space<vmem>>, vector<8x128xf32>
      tpu.vector_store %arg9[%c0_16, %c0_17], %18 {strides = array<i32>} : memref<8x128xf32, #tpu.memory_space<vmem>>, vector<8x128xf32>,
    } else {
    }
    return
  }
  func.func @transform_0(%arg0: i32, %arg1: i32, %arg2: i32) -> (i32, i32) {
    %c0_i32 = arith.constant 0 : i32
    %c0_i32_0 = arith.constant 0 : i32
    return %arg0, %c0_i32 : i32, i32
  }
  func.func @transform_1(%arg0: i32, %arg1: i32, %arg2: i32) -> (i32, i32) {
    %c0_i32 = arith.constant 0 : i32
    %c0_i32_0 = arith.constant 0 : i32
    return %c0_i32, %arg2 : i32, i32
  }
  func.func @transform_2(%arg0: i32, %arg1: i32, %arg2: i32) -> (i32, i32) {
    %c0_i32 = arith.constant 0 : i32
    %c0_i32_0 = arith.constant 0 : i32
    return %c0_i32, %arg2 : i32, i32
  }
  func.func @transform_3(%arg0: i32, %arg1: i32, %arg2: i32) -> (i32, i32) {
    %c0_i32 = arith.constant 0 : i32
    return %arg2, %arg1 : i32, i32
  }
  func.func @transform_4(%arg0: i32, %arg1: i32, %arg2: i32) -> (i32, i32) {
    %c0_i32 = arith.constant 0 : i32
    %c0_i32_0 = arith.constant 0 : i32
    return %c0_i32, %arg1 : i32, i32
  }
  func.func @transform_5(%arg0: i32, %arg1: i32, %arg2: i32) -> (i32, i32) {
    %c0_i32 = arith.constant 0 : i32
    return %arg0, %arg2 : i32, i32
  }
  func.func @transform_6(%arg0: i32, %arg1: i32, %arg2: i32) -> (i32, i32) {
    %c0_i32 = arith.constant 0 : i32
    return %arg0, %arg1 : i32, i32
  }
}

</mosaic_0001>

<bundles_post_ra>
// kernel: tpu_custom_call.1
= control target key start
LH: loop header
LB: loop body
LE: loop exit
PB: predicated region body
PF: predicated region fallthrough
CT: control target
= control target key end

     0   :  { %12 = vsyncpa [#allocation3], 0  ;;  %s521_s0 = inlined_call_operand.hbm [shape: f32[8,128], index: 0, kind: input, shape index: {}]   ;;  %s522_s1 = inlined_call_operand.hbm [shape: f32[128,256], index: 1, kind: input, shape index: {}]   ;;  %s523_s2 = inlined_call_operand.hbm [shape: f32[1,256], index: 2, kind: input, shape index: {}]   ;;  %s524_s3 = inlined_call_operand.hbm [shape: f32[256,128], index: 3, kind: input, shape index: {}]   ;;  %s525_s4 = inlined_call_operand.vmem [shape: f32[1,128], index: 4, kind: input, shape index: {}]   ;;  %s526_s5 = inlined_call_operand.hbm [shape: f32[8,256], index: 5, kind: output, shape index: {0}]   ;;  %s527_s6 = inlined_call_operand.hbm [shape: f32[8,128], index: 6, kind: output, shape index: {1}]  }
   0x1   :  { %13 = vsyncpa [#allocation6], 0 }
   0x2   :  { %14 = vsyncpa [#allocation9], 0 }
   0x3   :  { %15 = vsyncpa [#allocation4], 0  ;;  %s32_s23 = sshll.u32 %s522_s1, 4  ;;  %s33_s23 = int_to_ptr.hbm [resolvable:$true] %s32_s23 }
   0x4   :  { %16 = vsyncpa [#allocation12], 0  ;;  %s455_s24 = smov [#allocation5]   ;;  %s22_s28 = sshll.u32 %s521_s0, 4  ;;  %s23_s28 = int_to_ptr.hbm [resolvable:$true] %s22_s28 }
   0x5   :  { %s34_s25 = sshll.u32 %s455_s24, 4  ;;  %s456_s29 = smov 256   ;;  %s35_s25 = int_to_ptr.vmem [resolvable:$true] %s34_s25 }
   0x6   :  { %s457_s30 = smov 16   ;;  %s458_s7 = smov [#allocation2]  }
   0x7   :  { %40 = dma.hbm_to_vmem [thread:$0]  %s33_s23, 4096, %s35_s25, [#allocation6], %s456_s29, %s456_s29, %s457_s30  }
   0x8   :  { %s24_s8 = sshll.u32 %s458_s7, 4  ;;  %s46_s11 = sshll.u32 %s523_s2, 4  ;;  %s25_s8 = int_to_ptr.vmem [resolvable:$true] %s24_s8  ;;  %s47_s11 = int_to_ptr.hbm [resolvable:$true] %s46_s11 }
   0x9   :  { %27 = dma.hbm_to_vmem [thread:$0]  %s23_s28, 128, %s25_s8, [#allocation3]  }
   0xa   :  { %s56_s13 = sshll.u32 %s524_s3, 4  ;;  %s459_s14 = smov [#allocation7]   ;;  %s57_s13 = int_to_ptr.hbm [resolvable:$true] %s56_s13 }
   0xb   :  { %s48_s15 = sshll.u32 %s459_s14, 4  ;;  %s460_s0 = smov [#allocation8]   ;;  %s49_s15 = int_to_ptr.vmem [resolvable:$true] %s48_s15 }
   0xc   :  { %51 = dma.hbm_to_vmem [thread:$0]  %s47_s11, 32, %s49_s15, [#allocation6]  }
   0xd   :  { %s58_s16 = sshll.u32 %s460_s0, 4  ;;  %s461_s17 = smov 128   ;;  %s59_s16 = int_to_ptr.vmem [resolvable:$true] %s58_s16 }
   0xe   :  { %s462_s18 = smov 8  }
   0xf   :  { %64 = dma.hbm_to_vmem [thread:$0]  %s57_s13, 4096, %s59_s16, [#allocation9], %s461_s17, %s461_s17, %s462_s18  }
  0x10   :  { %445 = dma.done.wait [#allocation3], 128  }
  0x11   :  { %446 = vsyncadd [#allocation3], 4294967168 }
  0x12   :  { %447 = dma.done.wait [#allocation6], 4128  }
  0x13   :  { %448 = vsyncadd [#allocation6], 4294963168 }
  0x14   :  { %449 = dma.done.wait [#allocation9], 4096  }
  0x15   :  { %450 = vsyncadd [#allocation9], 4294963200  ;;  %v114_v0 = vld [vmem:[#allocation5 + $0xf0] sm:$0xff]  ;;  %v115_v1 = vld [vmem:[#allocation5 + $0xf8] sm:$0xff]  ;;  %s463_s2 = smov [#allocation10]   ;;  %s262_s21 = sshll.u32 %s526_s5, 4  ;;  %s263_s21 = int_to_ptr.hbm [resolvable:$true] %s262_s21 }
  0x16   :  { %v112_v2 = vld [vmem:[#allocation5 + $0xe0] sm:$0xff]  ;;  %122 = vmatpush.msra.mxu0 %v114_v0  ;;  %142 = vmatpush.msra.mxu1 %v115_v1  ;;  %v113_v3 = vld [vmem:[#allocation5 + $0xe8] sm:$0xff]  ;;  %v110_v4 = vld [vmem:[#allocation5 + $0xd0] sm:$0xff]  ;;  %s260_s3 = sshll.u32 %s463_s2, 4  ;;  %s464_s24 = smov [#allocation11]   ;;  %s261_s3 = int_to_ptr.vmem [resolvable:$true] %s260_s3 }
  0x17   :  { %v111_v5 = vld [vmem:[#allocation5 + $0xd8] sm:$0xff]  ;;  %v108_v6 = vld [vmem:[#allocation5 + $0xc0] sm:$0xff]  ;;  %v109_v7 = vld [vmem:[#allocation5 + $0xc8] sm:$0xff]  ;;  %s271_s25 = sshll.u32 %s464_s24, 4  ;;  %s273_s28 = sshll.u32 %s527_s6, 4  ;;  %s272_s25 = int_to_ptr.vmem [resolvable:$true] %s271_s25  ;;  %s274_s28 = int_to_ptr.hbm [resolvable:$true] %s273_s28 }
  0x18   :  { %123 = vmatpush.msra.mxu0 %v112_v2  ;;  %143 = vmatpush.msra.mxu1 %v113_v3  ;;  %v106_v8 = vld [vmem:[#allocation5 + $0xb0] sm:$0xff]  ;;  %v107_v9 = vld [vmem:[#allocation5 + $0xb8] sm:$0xff]  ;;  %v104_v10 = vld [vmem:[#allocation5 + $0xa0] sm:$0xff] }
  0x19   :  { %v105_v11 = vld [vmem:[#allocation5 + $0xa8] sm:$0xff]  ;;  %v102_v12 = vld [vmem:[#allocation5 + $0x90] sm:$0xff]  ;;  %v103_v13 = vld [vmem:[#allocation5 + $0x98] sm:$0xff] }
  0x1a   :  { %124 = vmatpush.msra.mxu0 %v110_v4  ;;  %144 = vmatpush.msra.mxu1 %v111_v5  ;;  %v181_v14 = vld [vmem:[#allocation8 + $0x78] sm:$0xff]  ;;  %v180_v16 = vld [vmem:[#allocation8 + $0x70] sm:$0xff]  ;;  %v101_v18 = vld [vmem:[#allocation5 + $0x88] sm:$0xff] }
  0x1b   :  { %v197_v15 = vld [vmem:[#allocation8 + $0xf8] sm:$0xff]  ;;  %198 = vmatpush.msra.mxu2 %v181_v14  ;;  %v196_v19 = vld [vmem:[#allocation8 + $0xf0] sm:$0xff]  ;;  %v179_v20 = vld [vmem:[#allocation8 + $0x68] sm:$0xff] }
  0x1c   :  { %125 = vmatpush.msra.mxu0 %v108_v6  ;;  %145 = vmatpush.msra.mxu1 %v109_v7  ;;  %v100_v17 = vld [vmem:[#allocation5 + $0x80] sm:$0xff]  ;;  %v195_v21 = vld [vmem:[#allocation8 + $0xe8] sm:$0xff]  ;;  %v99_v23 = vld [vmem:[#allocation5 + $0x78] sm:$0xff] }
  0x1d   :  { %218 = vmatpush.msra.mxu3 %v197_v15  ;;  %v98_v22 = vld [vmem:[#allocation5 + $0x70] sm:$0xff]  ;;  %199 = vmatpush.msra.mxu2 %v180_v16  ;;  %v178_v24 = vld [vmem:[#allocation8 + $0x60] sm:$0xff]  ;;  %v177_v28 = vld [vmem:[#allocation8 + $0x58] sm:$0xff] }
  0x1e   :  { %126 = vmatpush.msra.mxu0 %v106_v8  ;;  %146 = vmatpush.msra.mxu1 %v107_v9  ;;  %v194_v25 = vld [vmem:[#allocation8 + $0xe0] sm:$0xff]  ;;  %v193_v29 = vld [vmem:[#allocation8 + $0xd8] sm:$0xff]  ;;  %v94_v30 = vld [vmem:[#allocation5 + $0x50] sm:$0xff] }
  0x1f   :  { %219 = vmatpush.msra.mxu3 %v196_v19  ;;  %v96_v26 = vld [vmem:[#allocation5 + $0x60] sm:$0xff]  ;;  %v97_v27 = vld [vmem:[#allocation5 + $0x68] sm:$0xff]  ;;  %200 = vmatpush.msra.mxu2 %v179_v20  ;;  %v95_v31 = vld [vmem:[#allocation5 + $0x58] sm:$0xff] }
  0x20   :  { %127 = vmatpush.msra.mxu0 %v104_v10  ;;  %147 = vmatpush.msra.mxu1 %v105_v11  ;;  %v176_v32 = vld [vmem:[#allocation8 + $0x50] sm:$0xff]  ;;  %v92_v34 = vld [vmem:[#allocation5 + $0x40] sm:$0xff]  ;;  %v93_v35 = vld [vmem:[#allocation5 + $0x48] sm:$0xff] }
  0x21   :  { %220 = vmatpush.msra.mxu3 %v195_v21  ;;  %201 = vmatpush.msra.mxu2 %v178_v24  ;;  %v192_v33 = vld [vmem:[#allocation8 + $0xd0] sm:$0xff]  ;;  %v175_v36 = vld [vmem:[#allocation8 + $0x48] sm:$0xff]  ;;  %v174_v40 = vld [vmem:[#allocation8 + $0x40] sm:$0xff] }
  0x22   :  { %128 = vmatpush.msra.mxu0 %v102_v12  ;;  %148 = vmatpush.msra.mxu1 %v103_v13  ;;  %v191_v37 = vld [vmem:[#allocation8 + $0xc8] sm:$0xff]  ;;  %v91_v39 = vld [vmem:[#allocation5 + $0x38] sm:$0xff]  ;;  %v190_v41 = vld [vmem:[#allocation8 + $0xc0] sm:$0xff] }
  0x23   :  { %221 = vmatpush.msra.mxu3 %v194_v25  ;;  %202 = vmatpush.msra.mxu2 %v177_v28  ;;  %v90_v38 = vld [vmem:[#allocation5 + $0x30] sm:$0xff]  ;;  %v88_v42 = vld [vmem:[#allocation5 + $0x20] sm:$0xff]  ;;  %v89_v43 = vld [vmem:[#allocation5 + $0x28] sm:$0xff] }
  0x24   :  { %129 = vmatpush.msra.mxu0 %v100_v17  ;;  %149 = vmatpush.msra.mxu1 %v101_v18  ;;  %v173_v44 = vld [vmem:[#allocation8 + $0x38] sm:$0xff]  ;;  %v86_v46 = vld [vmem:[#allocation5 + $0x10] sm:$0xff]  ;;  %v85_v51 = vld [vmem:[#allocation5 + $0x8] sm:$0xff] }
  0x25   :  { %222 = vmatpush.msra.mxu3 %v193_v29  ;;  %203 = vmatpush.msra.mxu2 %v176_v32  ;;  %v189_v45 = vld [vmem:[#allocation8 + $0xb8] sm:$0xff]  ;;  %v172_v48 = vld [vmem:[#allocation8 + $0x30] sm:$0xff]  ;;  %v171_v53 = vld [vmem:[#allocation8 + $0x28] sm:$0xff] }
  0x26   :  { %130 = vmatpush.msra.mxu0 %v98_v22  ;;  %150 = vmatpush.msra.mxu1 %v99_v23  ;;  %v87_v47 = vld [vmem:[#allocation5 + $0x18] sm:$0xff]  ;;  %v84_v50 = vld [vmem:[#allocation5] sm:$0xff]  ;;  %v187_v54 = vld [vmem:[#allocation8 + $0xa8] sm:$0xff] }
  0x27   :  { %223 = vmatpush.msra.mxu3 %v192_v33  ;;  %204 = vmatpush.msra.mxu2 %v175_v36  ;;  %v188_v49 = vld [vmem:[#allocation8 + $0xb0] sm:$0xff]  ;;  %v170_v55 = vld [vmem:[#allocation8 + $0x20] sm:$0xff]  ;;  %v169_v57 = vld [vmem:[#allocation8 + $0x18] sm:$0xff] }
  0x28   :  { %131 = vmatpush.msra.mxu0 %v96_v26  ;;  %151 = vmatpush.msra.mxu1 %v97_v27  ;;  %v83_v52 = vld [vmem:[#allocation2] sm:$0xff]  ;;  %v186_v56 = vld [vmem:[#allocation8 + $0xa0] sm:$0xff]  ;;  %v167_v61 = vld [vmem:[#allocation8 + $0x8] sm:$0xff] }
  0x29   :  { %224 = vmatpush.msra.mxu3 %v191_v37  ;;  %205 = vmatpush.msra.mxu2 %v174_v40  ;;  %v185_v58 = vld [vmem:[#allocation8 + $0x98] sm:$0xff]  ;;  %v168_v59 = vld [vmem:[#allocation8 + $0x10] sm:$0xff]  ;;  %v183_v62 = vld [vmem:[#allocation8 + $0x88] sm:$0xff] }
  0x2a   :  { %132 = vmatpush.msra.mxu0 %v94_v30  ;;  %152 = vmatpush.msra.mxu1 %v95_v31  ;;  %v184_v60 = vld [vmem:[#allocation8 + $0x90] sm:$0xff]  ;;  %v166_v63 = vld [vmem:[#allocation8] sm:$0xff]  ;;  %v116_v1 = vld [vmem:[#allocation7] sm:$0x3] }
  0x2b   :  { %225 = vmatpush.msra.mxu3 %v190_v41  ;;  %206 = vmatpush.msra.mxu2 %v173_v44  ;;  %v182_v0 = vld [vmem:[#allocation8 + $0x80] sm:$0xff]  ;;  %v118_v2 = vperm.slane %v116_v1, 0  ;;  %v119_v3 = vperm.slane %v116_v1, 1  ;;  %v300_v10 = vld [vmem:[%s525_s4] ss:$0 sm:$0xff] }
  0x2c   :  { %133 = vmatpush.msra.mxu0 %v92_v34  ;;  %153 = vmatpush.msra.mxu1 %v93_v35 }
  0x2d   :  { %226 = vmatpush.msra.mxu3 %v189_v45  ;;  %207 = vmatpush.msra.mxu2 %v172_v48 }
  0x2e   :  { %134 = vmatpush.msra.mxu0 %v90_v38  ;;  %154 = vmatpush.msra.mxu1 %v91_v39 }
  0x2f   :  { %227 = vmatpush.msra.mxu3 %v188_v49  ;;  %208 = vmatpush.msra.mxu2 %v171_v53 }
  0x30   :  { %135 = vmatpush.msra.mxu0 %v88_v42  ;;  %155 = vmatpush.msra.mxu1 %v89_v43 }
  0x31   :  { %228 = vmatpush.msra.mxu3 %v187_v54  ;;  %209 = vmatpush.msra.mxu2 %v170_v55 }
  0x32   :  { %136 = vmatpush.msra.mxu0 %v86_v46  ;;  %156 = vmatpush.msra.mxu1 %v87_v47 }
  0x33   :  { %229 = vmatpush.msra.mxu3 %v186_v56  ;;  %210 = vmatpush.msra.mxu2 %v169_v57 }
  0x34   :  { %137 = vmatpush.msra.mxu0 %v84_v50  ;;  %157 = vmatpush.msra.mxu1 %v85_v51 }
  0x35   :  { %138 = vmatmul.f32.vlgmr.msra.gmra.mxu0 %v83_v52  ;;  %158 = vmatmul.f32.vlgmr.msra.gmra.mxu1 %v83_v52 }
  0x36   :  { %230 = vmatpush.msra.mxu3 %v185_v58  ;;  %211 = vmatpush.msra.mxu2 %v168_v59 }
  0x38   :  { %231 = vmatpush.msra.mxu3 %v184_v60  ;;  %212 = vmatpush.msra.mxu2 %v167_v61 }
  0x3a   :  { %232 = vmatpush.msra.mxu3 %v183_v62  ;;  %213 = vmatpush.msra.mxu2 %v166_v63 }
  0x3c   :  { %233 = vmatpush.msra.mxu3 %v182_v0 }
  0xb2   :  { %v139_v4 = vpop.f32.mrf.mxu0  ;;  %v159_v5 = vpop.f32.mrf.mxu1 }
  0xb3   :  { %v140_v6 = vadd.f32 %v139_v4, %v118_v2  ;;  %v160_v7 = vadd.f32 %v159_v5, %v119_v3 }
  0xb5   :  { %v162_v8 = vmax.f32 %v140_v6, 0.0  ;;  %v163_v9 = vmax.f32 %v160_v7, 0.0 }
  0xb7   :  { %164 = vst [vmem:[#allocation10] sm:$0xff] %v162_v8  ;;  %214 = vmatmul.f32.vlgmr.msra.gmra.mxu2 %v162_v8  ;;  %234 = vmatmul.f32.vlgmr.msra.gmra.mxu3 %v163_v9 }
  0xb8   :  { %165 = vst [vmem:[#allocation10 + $0x8] sm:$0xff] %v163_v9 }
  0xb9   :  { %265 = dma.vmem_to_hbm [thread:$0]  %s261_s3, 256, %s263_s21, [#allocation4]  }
 0x13a   :  { %v215_v11 = vpop.f32.mrf.mxu2  ;;  %v235_v12 = vpop.f32.mrf.mxu3 }
 0x13b   :  { %v236_v13 = vadd.f32 %v235_v12, %v215_v11 }
 0x13d   :  { %v246_v14 = vadd.f32 %v300_v10, %v236_v13 }
 0x13f   :  { %247 = vst [vmem:[#allocation11] sm:$0xff] %v246_v14 }
 0x140   :  { %276 = dma.vmem_to_hbm [thread:$0]  %s272_s25, 128, %s274_s28, [#allocation12]  }
 0x141   :  { %451 = dma.done.wait [#allocation4], 256  }
 0x142   :  { %452 = vsyncadd [#allocation4], 4294967040 }
 0x143   :  { %453 = dma.done.wait [#allocation12], 128  }
 0x144   :  { %454 = vsyncadd [#allocation12], 4294967168 }
 0x145   :  { %285 = vsyncpa [#allocation3], 1 }
 0x146   :  { %286 = vsyncpa [#allocation6], 1 }
 0x147   :  { %287 = vsyncpa [#allocation9], 1 }
 0x148   :  { %288 = vsyncpa [#allocation4], 1 }
 0x149   :  { %289 = vsyncpa [#allocation12], 1 }

</bundles_post_ra>
